<compile_context>
chip_gen: v7x
topology: tpu7x:2x2x1
jax: 0.10.0
libtpu: 0.0.40
codegen_flags: <defaults>
</compile_context>

<pallas_src>
import functools

import jax
import jax.numpy as jnp
from jax.experimental import pallas as pl
from jax.experimental.pallas import tpu as pltpu


def _self_attn_kernel(x_full_ref, x_res_ref, wq_ref, bq_ref, wk_ref, bk_ref,
                      wv_ref, bv_ref, gamma_ref, out_ref, k_sc, v_sc, *,
                      approx_recip, vpu_energy_max_cqk=8):
    mm_dtype = x_full_ref.dtype
    i = pl.program_id(1)

    # K / V depend on the whole image only -> compute once per batch image
    # (query-tile index 0) and cache in persistent VMEM scratch.
    @pl.when(i == 0)
    def _():
        xf = x_full_ref[0]                                                  # (C, N) mm dtype
        k_sc[...] = (jnp.dot(wk_ref[...], xf,
                             preferred_element_type=jnp.float32) + bk_ref[...])   # (Cqk, N)
        v_sc[...] = (jnp.dot(wv_ref[...], xf,
                             preferred_element_type=jnp.float32) + bv_ref[...])   # (C,  N)

    # Query tile (pixels in lanes) in f32; also used for the residual add.
    xr = x_res_ref[0]                                                       # (C, TQ) f32
    q = (jnp.dot(wq_ref[...], xr.astype(mm_dtype),
                 preferred_element_type=jnp.float32) + bq_ref[...])         # (Cqk, TQ) f32

    k = k_sc[...]                                                           # (Cqk, N) f32
    v = v_sc[...]                                                           # (C,   N) f32

    cqk = q.shape[0]
    q_t = q.T                                                               # (TQ, Cqk): tiny relayout
    if cqk <= vpu_energy_max_cqk:
        # Contraction depth Cqk is far below MXU depth -> VPU broadcast
        # outer products instead of a nearly-empty matmul.
        energy = q_t[:, 0:1] * k[0:1, :]                                    # (TQ, N) f32
        for o in range(1, cqk):
            energy = energy + q_t[:, o:o + 1] * k[o:o + 1, :]
    else:
        energy = jnp.dot(q_t.astype(mm_dtype), k.astype(mm_dtype),
                         preferred_element_type=jnp.float32)                # (TQ, N) f32

    # Row softmax over keys (lane dim), numerically stable, all f32.
    m = jnp.max(energy, axis=-1, keepdims=True)
    p = jnp.exp(energy - m)
    denom = jnp.sum(p, axis=-1, keepdims=True)
    attention = p * pl.reciprocal(denom, approx=approx_recip)               # (TQ, N)

    # out[c, i] = sum_j v[c, j] * attention[i, j]: contract the last axis of
    # both operands (A @ B^T form) so no explicit transpose of attention.
    attn_out = jax.lax.dot_general(
        v.astype(mm_dtype), attention.astype(mm_dtype),
        dimension_numbers=(((1,), (1,)), ((), ())),
        preferred_element_type=jnp.float32)                                 # (C, TQ)

    out_ref[0] = (gamma_ref[0] * attn_out + xr).astype(out_ref.dtype)


def self_attention(x_nchw, wq, bq, wk, bk, wv, bv, gamma, *,
                   matmul_dtype=jnp.bfloat16, approx_recip=True, tq=128):
    """x_nchw: (B, C, W, H) f32; wq/wk: (C, Cqk); wv: (C, C). Returns (B, C, W, H) f32."""
    B, C, W, H = x_nchw.shape
    N = W * H
    Cqk = wq.shape[1]

    # Channel-major (B, C, N) is torch's native .view -- no transposes anywhere.
    x_f32 = x_nchw.reshape(B, C, N).astype(jnp.float32)
    x_mm = x_f32.astype(matmul_dtype)       # full-N block used by the K/V projections

    # Weights stored (out, in) so projections are plain (out,C) @ (C,N) dots.
    wq_t = wq.T.astype(matmul_dtype)
    wk_t = wk.T.astype(matmul_dtype)
    wv_t = wv.T.astype(matmul_dtype)
    bq2 = bq.reshape(Cqk, 1).astype(jnp.float32)
    bk2 = bk.reshape(Cqk, 1).astype(jnp.float32)
    bv2 = bv.reshape(C, 1).astype(jnp.float32)
    gamma1 = jnp.asarray(gamma, jnp.float32).reshape(1)

    if N % tq != 0:
        tq = N                               # fallback: single (monolithic) query tile
    n_qt = N // tq

    full = lambda b, i: (0, 0)
    kernel = functools.partial(_self_attn_kernel, approx_recip=approx_recip)

    out_flat = pl.pallas_call(
        kernel,
        out_shape=jax.ShapeDtypeStruct((B, C, N), jnp.float32),
        grid_spec=pltpu.PrefetchScalarGridSpec(
            num_scalar_prefetch=0,
            grid=(B, n_qt),
            in_specs=[
                pl.BlockSpec((1, C, N), lambda b, i: (b, 0, 0)),     # x (all pixels, K/V)
                pl.BlockSpec((1, C, tq), lambda b, i: (b, 0, i)),    # x (query tile, f32)
                pl.BlockSpec((Cqk, C), full),                        # wq^T
                pl.BlockSpec((Cqk, 1), full),                        # bq
                pl.BlockSpec((Cqk, C), full),                        # wk^T
                pl.BlockSpec((Cqk, 1), full),                        # bk
                pl.BlockSpec((C, C), full),                          # wv^T
                pl.BlockSpec((C, 1), full),                          # bv
                pl.BlockSpec(memory_space=pltpu.MemorySpace.SMEM),   # gamma scalar
            ],
            out_specs=pl.BlockSpec((1, C, tq), lambda b, i: (b, 0, i)),
            scratch_shapes=[
                pltpu.VMEM((Cqk, N), jnp.float32),                   # cached K
                pltpu.VMEM((C, N), jnp.float32),                     # cached V
            ],
        ),
        compiler_params=pltpu.CompilerParams(
            # K/V cache carries state across the query-tile axis -> "arbitrary";
            # batch axis stays "parallel" for megacore sharding.
            dimension_semantics=("parallel", "arbitrary"),
            vmem_limit_bytes=32 * 1024 * 1024),
    )(x_mm, x_f32, wq_t, bq2, wk_t, bk2, wv_t, bv2, gamma1)

    return out_flat.reshape(B, C, W, H)


def _reference(x_nchw, wq, bq, wk, bk, wv, bv, gamma):
    """Pure-JAX reference mirroring the PyTorch forward exactly."""
    B, C, W, H = x_nchw.shape
    N = W * H
    x_flat = x_nchw.reshape(B, C, N)                                # (B, C, N)
    q = jnp.einsum('bcn,co->bon', x_flat, wq) + bq[None, :, None]   # (B, Cqk, N)
    k = jnp.einsum('bcn,co->bon', x_flat, wk) + bk[None, :, None]
    v = jnp.einsum('bcn,co->bon', x_flat, wv) + bv[None, :, None]   # (B, C, N)
    proj_query = jnp.transpose(q, (0, 2, 1))                        # (B, N, Cqk)
    energy = jnp.einsum('bnc,bcm->bnm', proj_query, k)              # (B, N, N)
    attention = jax.nn.softmax(energy, axis=-1)
    out = jnp.einsum('bcn,bmn->bcm', v, attention)                  # (B, C, N)
    out = out.reshape(B, C, W, H)
    return gamma * out + x_nchw


if __name__ == "__main__":
    B, C, W, H = 2, 4, 16, 16
    Cqk = max(1, C // 8)

    key = jax.random.PRNGKey(0)
    kx, kq, kbq, kk, kbk, kv, kbv = jax.random.split(key, 7)

    x = jax.random.normal(kx, (B, C, W, H), dtype=jnp.float32)
    wq = 0.3 * jax.random.normal(kq, (C, Cqk), dtype=jnp.float32)
    bq = 0.1 * jax.random.normal(kbq, (Cqk,), dtype=jnp.float32)
    wk = 0.3 * jax.random.normal(kk, (C, Cqk), dtype=jnp.float32)
    bk = 0.1 * jax.random.normal(kbk, (Cqk,), dtype=jnp.float32)
    wv = 0.3 * jax.random.normal(kv, (C, C), dtype=jnp.float32)
    bv = 0.1 * jax.random.normal(kbv, (C,), dtype=jnp.float32)
    # nn.Parameter(torch.zeros(1)) in __init__; nonzero here so the attention
    # path is actually exercised numerically.
    gamma = jnp.float32(0.5)

    ref = _reference(x, wq, bq, wk, bk, wv, bv, gamma)

    # Perf path: bf16 MXU operands (f32 accumulation/softmax) + EUP approx recip.
    out = self_attention(x, wq, bq, wk, bk, wv, bv, gamma)
    out = jax.block_until_ready(out)
    assert out.shape == (B, C, W, H)
    assert jnp.allclose(out, ref, atol=7e-2, rtol=7e-2), "bf16 path mismatch vs reference"

    # Precise path: f32 operands, exact reciprocal -- tight semantic check.
    out_f32 = self_attention(x, wq, bq, wk, bk, wv, bv, gamma,
                             matmul_dtype=jnp.float32, approx_recip=False)
    out_f32 = jax.block_until_ready(out_f32)
    assert jnp.allclose(out_f32, ref, atol=5e-3, rtol=5e-3), "f32 path mismatch vs reference"

    print("KERNEL_OK")
</pallas_src>

<mosaic_0001>
module attributes {stable_mosaic.version = 11 : i64} {
  func.func @_self_attn_kernel(%arg0: i32, %arg1: i32, %arg2: memref<1x4x256xbf16, #tpu.memory_space<vmem>>, %arg3: memref<1x4x128xf32, #tpu.memory_space<vmem>>, %arg4: memref<1x4xbf16, #tpu.memory_space<vmem>>, %arg5: memref<1x1xf32, #tpu.memory_space<vmem>>, %arg6: memref<1x4xbf16, #tpu.memory_space<vmem>>, %arg7: memref<1x1xf32, #tpu.memory_space<vmem>>, %arg8: memref<4x4xbf16, #tpu.memory_space<vmem>>, %arg9: memref<4x1xf32, #tpu.memory_space<vmem>>, %arg10: memref<1xf32, #tpu.memory_space<smem>>, %arg11: memref<1x4x128xf32, #tpu.memory_space<vmem>>, %arg12: memref<1x256xf32, #tpu.memory_space<vmem>>, %arg13: memref<4x256xf32, #tpu.memory_space<vmem>>) attributes {dimension_semantics = [#tpu.dimension_semantics<parallel>, #tpu.dimension_semantics<arbitrary>], iteration_bounds = array<i64: 2, 2>, scalar_prefetch = 0 : i64, scratch_operands = 2 : i64, tpu.core_type = #tpu.core_type<tc>, window_params = [{transform_indices = @transform_0, window_bounds = array<i64: 1, 4, 256>}, {transform_indices = @transform_1, window_bounds = array<i64: 1, 4, 128>}, {pipeline_mode = #tpu.pipeline_mode<synchronous>, transform_indices = @transform_2, window_bounds = array<i64: 1, 4>}, {pipeline_mode = #tpu.pipeline_mode<synchronous>, transform_indices = @transform_3, window_bounds = array<i64: 1, 1>}, {pipeline_mode = #tpu.pipeline_mode<synchronous>, transform_indices = @transform_4, window_bounds = array<i64: 1, 4>}, {pipeline_mode = #tpu.pipeline_mode<synchronous>, transform_indices = @transform_5, window_bounds = array<i64: 1, 1>}, {pipeline_mode = #tpu.pipeline_mode<synchronous>, transform_indices = @transform_6, window_bounds = array<i64: 4, 4>}, {pipeline_mode = #tpu.pipeline_mode<synchronous>, transform_indices = @transform_7, window_bounds = array<i64: 4, 1>}, {transform_indices = @transform_8, window_bounds = array<i64: 1>}, {transform_indices = @transform_9, window_bounds = array<i64: 1, 4, 128>}]} {
    %c0_i32 = arith.constant 0 : i32
    %0 = arith.cmpi eq, %arg1, %c0_i32 : i32
    %1 = arith.extui %0 : i1 to i32
    %c0_i32_0 = arith.constant 0 : i32
    %2 = arith.cmpi ne, %1, %c0_i32_0 : i32
    scf.if %2 {
      %c0_18 = arith.constant 0 : index
      %c0_19 = arith.constant 0 : index
      %c0_20 = arith.constant 0 : index
      %37 = vector.load %arg2[%c0_18, %c0_19, %c0_20] : memref<1x4x256xbf16, #tpu.memory_space<vmem>>, vector<1x4x256xbf16>
      %38 = vector.shape_cast %37 : vector<1x4x256xbf16> to vector<4x256xbf16>
      %c0_21 = arith.constant 0 : index
      %c0_22 = arith.constant 0 : index
      %39 = vector.load %arg6[%c0_21, %c0_22] : memref<1x4xbf16, #tpu.memory_space<vmem>>, vector<1x4xbf16>
      %cst_23 = arith.constant dense<0.000000e+00> : vector<1x256xf32>
      %40 = tpu.matmul %39, %38, %cst_23 {dimension_numbers = #tpu.dot_dimension_numbers<[1], [0], [0], [1], [0, 0, 1, 1], [], []>} : vector<1x4xbf16>, vector<4x256xbf16>, vector<1x256xf32> -> vector<1x256xf32>
      %c0_24 = arith.constant 0 : index
      %c0_25 = arith.constant 0 : index
      %41 = vector.load %arg7[%c0_24, %c0_25] : memref<1x1xf32, #tpu.memory_space<vmem>>, vector<1x1xf32>
      %42 = vector.broadcast %41 : vector<1x1xf32> to vector<1x256xf32>
      %43 = arith.addf %40, %42 : vector<1x256xf32>
      %c0_26 = arith.constant 0 : index
      %c0_27 = arith.constant 0 : index
      %44 = vector.load %arg12[%c0_26, %c0_27] : memref<1x256xf32, #tpu.memory_space<vmem>>, vector<1x256xf32>
      tpu.vector_store %arg12[%c0_26, %c0_27], %43 {strides = array<i32>} : memref<1x256xf32, #tpu.memory_space<vmem>>, vector<1x256xf32>,
      %c0_28 = arith.constant 0 : index
      %c0_29 = arith.constant 0 : index
      %45 = vector.load %arg8[%c0_28, %c0_29] : memref<4x4xbf16, #tpu.memory_space<vmem>>, vector<4x4xbf16>
      %cst_30 = arith.constant dense<0.000000e+00> : vector<4x256xf32>
      %46 = tpu.matmul %45, %38, %cst_30 {dimension_numbers = #tpu.dot_dimension_numbers<[1], [0], [0], [1], [0, 0, 1, 1], [], []>} : vector<4x4xbf16>, vector<4x256xbf16>, vector<4x256xf32> -> vector<4x256xf32>
      %c0_31 = arith.constant 0 : index
      %c0_32 = arith.constant 0 : index
      %47 = vector.load %arg9[%c0_31, %c0_32] : memref<4x1xf32, #tpu.memory_space<vmem>>, vector<4x1xf32>
      %48 = vector.broadcast %47 : vector<4x1xf32> to vector<4x256xf32>
      %49 = arith.addf %46, %48 : vector<4x256xf32>
      %c0_33 = arith.constant 0 : index
      %c0_34 = arith.constant 0 : index
      %50 = vector.load %arg13[%c0_33, %c0_34] : memref<4x256xf32, #tpu.memory_space<vmem>>, vector<4x256xf32>
      tpu.vector_store %arg13[%c0_33, %c0_34], %49 {strides = array<i32>} : memref<4x256xf32, #tpu.memory_space<vmem>>, vector<4x256xf32>,
    } else {
    }
    %c0 = arith.constant 0 : index
    %c0_1 = arith.constant 0 : index
    %c0_2 = arith.constant 0 : index
    %3 = vector.load %arg3[%c0, %c0_1, %c0_2] : memref<1x4x128xf32, #tpu.memory_space<vmem>>, vector<1x4x128xf32>
    %4 = vector.shape_cast %3 : vector<1x4x128xf32> to vector<4x128xf32>
    %c0_3 = arith.constant 0 : index
    %c0_4 = arith.constant 0 : index
    %5 = vector.load %arg4[%c0_3, %c0_4] : memref<1x4xbf16, #tpu.memory_space<vmem>>, vector<1x4xbf16>
    %6 = arith.truncf %4 : vector<4x128xf32> to vector<4x128xbf16>
    %cst = arith.constant dense<0.000000e+00> : vector<1x128xf32>
    %7 = tpu.matmul %5, %6, %cst {dimension_numbers = #tpu.dot_dimension_numbers<[1], [0], [0], [1], [0, 0, 1, 1], [], []>} : vector<1x4xbf16>, vector<4x128xbf16>, vector<1x128xf32> -> vector<1x128xf32>
    %c0_5 = arith.constant 0 : index
    %c0_6 = arith.constant 0 : index
    %8 = vector.load %arg5[%c0_5, %c0_6] : memref<1x1xf32, #tpu.memory_space<vmem>>, vector<1x1xf32>
    %9 = vector.broadcast %8 : vector<1x1xf32> to vector<1x128xf32>
    %10 = arith.addf %7, %9 : vector<1x128xf32>
    %c0_7 = arith.constant 0 : index
    %c0_8 = arith.constant 0 : index
    %11 = vector.load %arg12[%c0_7, %c0_8] : memref<1x256xf32, #tpu.memory_space<vmem>>, vector<1x256xf32>
    %c0_9 = arith.constant 0 : index
    %c0_10 = arith.constant 0 : index
    %12 = vector.load %arg13[%c0_9, %c0_10] : memref<4x256xf32, #tpu.memory_space<vmem>>, vector<4x256xf32>
    %13 = tpu.transpose %10, [1, 0] : vector<1x128xf32> -> vector<128x1xf32>
    %14 = vector.broadcast %13 : vector<128x1xf32> to vector<128x256xf32>
    %15 = vector.broadcast %11 : vector<1x256xf32> to vector<128x256xf32>
    %16 = arith.mulf %14, %15 : vector<128x256xf32>
    %cst_11 = arith.constant dense<0xFF800000> : vector<128xf32>
    %17 = vector.multi_reduction <maximumf>, %16, %cst_11 [1] : vector<128x256xf32> to vector<128xf32>
    %18 = vector.shape_cast %17 : vector<128xf32> to vector<128x1xf32>
    %19 = vector.broadcast %18 : vector<128x1xf32> to vector<128x256xf32>
    %20 = arith.subf %16, %19 : vector<128x256xf32>
    %21 = math.exp %20 : vector<128x256xf32>
    %cst_12 = arith.constant dense<0.000000e+00> : vector<128xf32>
    %22 = vector.multi_reduction <add>, %21, %cst_12 [1] : vector<128x256xf32> to vector<128xf32>
    %23 = vector.shape_cast %22 : vector<128xf32> to vector<128x1xf32>
    %24 = tpu.reciprocal %23 {approx = true} : vector<128x1xf32> -> vector<128x1xf32>
    %25 = vector.broadcast %24 : vector<128x1xf32> to vector<128x256xf32>
    %26 = arith.mulf %21, %25 : vector<128x256xf32>
    %27 = arith.truncf %12 : vector<4x256xf32> to vector<4x256xbf16>
    %28 = arith.truncf %26 : vector<128x256xf32> to vector<128x256xbf16>
    %cst_13 = arith.constant dense<0.000000e+00> : vector<4x128xf32>
    %29 = tpu.matmul %27, %28, %cst_13 {dimension_numbers = #tpu.dot_dimension_numbers<[1], [1], [0], [0], [0, 0, 1, 0], [], []>} : vector<4x256xbf16>, vector<128x256xbf16>, vector<4x128xf32> -> vector<4x128xf32>
    %c0_14 = arith.constant 0 : index
    %30 = memref.load %arg10[%c0_14] : memref<1xf32, #tpu.memory_space<smem>>
    %31 = vector.broadcast %30 : f32 to vector<4x128xf32>
    %32 = arith.mulf %31, %29 : vector<4x128xf32>
    %33 = arith.addf %32, %4 : vector<4x128xf32>
    %c0_15 = arith.constant 0 : index
    %c0_16 = arith.constant 0 : index
    %c0_17 = arith.constant 0 : index
    %34 = vector.load %arg11[%c0_15, %c0_16, %c0_17] : memref<1x4x128xf32, #tpu.memory_space<vmem>>, vector<1x4x128xf32>
    %35 = vector.shape_cast %34 : vector<1x4x128xf32> to vector<4x128xf32>
    %36 = vector.shape_cast %33 : vector<4x128xf32> to vector<1x4x128xf32>
    tpu.vector_store %arg11[%c0_15, %c0_16, %c0_17], %36 {strides = array<i32>} : memref<1x4x128xf32, #tpu.memory_space<vmem>>, vector<1x4x128xf32>,
    return
  }
  func.func @transform_0(%arg0: i32, %arg1: i32) -> (i32, i32, i32) {
    %c0_i32 = arith.constant 0 : i32
    %c0_i32_0 = arith.constant 0 : i32
    %c0_i32_1 = arith.constant 0 : i32
    return %arg0, %c0_i32, %c0_i32_0 : i32, i32, i32
  }
  func.func @transform_1(%arg0: i32, %arg1: i32) -> (i32, i32, i32) {
    %c0_i32 = arith.constant 0 : i32
    %c0_i32_0 = arith.constant 0 : i32
    return %arg0, %c0_i32, %arg1 : i32, i32, i32
  }
  func.func @transform_2(%arg0: i32, %arg1: i32) -> (i32, i32) {
    %c0_i32 = arith.constant 0 : i32
    %c0_i32_0 = arith.constant 0 : i32
    %c0_i32_1 = arith.constant 0 : i32
    return %c0_i32, %c0_i32_0 : i32, i32
  }
  func.func @transform_3(%arg0: i32, %arg1: i32) -> (i32, i32) {
    %c0_i32 = arith.constant 0 : i32
    %c0_i32_0 = arith.constant 0 : i32
    %c0_i32_1 = arith.constant 0 : i32
    return %c0_i32, %c0_i32_0 : i32, i32
  }
  func.func @transform_4(%arg0: i32, %arg1: i32) -> (i32, i32) {
    %c0_i32 = arith.constant 0 : i32
    %c0_i32_0 = arith.constant 0 : i32
    %c0_i32_1 = arith.constant 0 : i32
    return %c0_i32, %c0_i32_0 : i32, i32
  }
  func.func @transform_5(%arg0: i32, %arg1: i32) -> (i32, i32) {
    %c0_i32 = arith.constant 0 : i32
    %c0_i32_0 = arith.constant 0 : i32
    %c0_i32_1 = arith.constant 0 : i32
    return %c0_i32, %c0_i32_0 : i32, i32
  }
  func.func @transform_6(%arg0: i32, %arg1: i32) -> (i32, i32) {
    %c0_i32 = arith.constant 0 : i32
    %c0_i32_0 = arith.constant 0 : i32
    %c0_i32_1 = arith.constant 0 : i32
    return %c0_i32, %c0_i32_0 : i32, i32
  }
  func.func @transform_7(%arg0: i32, %arg1: i32) -> (i32, i32) {
    %c0_i32 = arith.constant 0 : i32
    %c0_i32_0 = arith.constant 0 : i32
    %c0_i32_1 = arith.constant 0 : i32
    return %c0_i32, %c0_i32_0 : i32, i32
  }
  func.func @transform_8(%arg0: i32, %arg1: i32) -> i32 {
    %c0_i32 = arith.constant 0 : i32
    %c0_i32_0 = arith.constant 0 : i32
    return %c0_i32 : i32
  }
  func.func @transform_9(%arg0: i32, %arg1: i32) -> (i32, i32, i32) {
    %c0_i32 = arith.constant 0 : i32
    %c0_i32_0 = arith.constant 0 : i32
    return %arg0, %c0_i32, %arg1 : i32, i32, i32
  }
}

</mosaic_0001>

<bundles_post_ra>
// kernel: tpu_custom_call.1
= control target key start
LH: loop header
LB: loop body
LE: loop exit
PB: predicated region body
PF: predicated region fallthrough
CT: control target
= control target key end

     0   :  { %s2212_s0 = inlined_call_operand.hbm [shape: bf16[2,4,256], index: 0, kind: input, shape index: {}]   ;;  %s2213_s1 = inlined_call_operand.vmem [shape: f32[2,4,256], index: 1, kind: input, shape index: {}]   ;;  %s2214_s2 = inlined_call_operand.vmem [shape: bf16[1,4], index: 2, kind: input, shape index: {}]   ;;  %s2215_s3 = inlined_call_operand.<no memory space> [shape: f32[1,1], index: 3, kind: input, shape index: {}]   ;;  %s2216_s4 = inlined_call_operand.vmem [shape: bf16[1,4], index: 4, kind: input, shape index: {}]   ;;  %s2217_s6 = inlined_call_operand.vmem [shape: bf16[4,4], index: 6, kind: input, shape index: {}]   ;;  %s2218_s7 = inlined_call_operand.vmem [shape: f32[4,1], index: 7, kind: input, shape index: {}]   ;;  %s2219_s8 = inlined_call_operand.<no memory space> [shape: f32[1], index: 8, kind: input, shape index: {}]   ;;  %s2220_s9 = inlined_call_operand.hbm [shape: f32[2,4,256], index: 9, kind: output, shape index: {}]   ;;  %s2221_s5 = inlined_call_operand.<no memory space> [shape: f32[1,1], index: 5, kind: input, shape index: {}]  }
   0x1   :  { %v14_v0 = vstv %s2215_s3  ;;  %v16_v1 = vstv %s2221_s5  ;;  %18 = sst [smem:[#allocation6]] %s2219_s8 }
   0x2   :  { %15 = vst [vmem:[#allocation4] sm:$0x1] %v14_v0  ;;  %17 = vst [vmem:[#allocation5] sm:$0x1] %v16_v1 }
   0x3   :  { %19 = vsyncpa [#allocation8], 0 }
   0x4   :  { %21 = vsyncpa [#allocation8 + $0x1], 0 }
   0x5   :  { %22 = vsyncpa [#allocation9], 0 }
   0x6   :  { %24 = vsyncpa [#allocation9 + $0x1], 0  ;;  %s1657_s15 = smov 0   ;;  %s1659_s16 = smov 0  }
   0x7   :  { %s1661_s17 = smov 0   ;;  %s1663_s3 = smov 0  }
   0x8   :  { %s1665_s18 = smov 0   ;;  %s1667_s5 = smov 0  }
   0x9   :  { %s1669_s19 = smov 0   ;;  %s1671_s8 = smov 0  }
   0xa   :  { %s1673_s20 = smov 0   ;;  %s1675_s21 = smov 0  }
   0xb   :  { %s1677_s22 = smov 0  }
   0xc LB: > { %2227 = sst [smem:[#allocation13_spill]] %s1581_s20  ;;  %s1197_s23 = sadd.s32 4294967295, %s1589_s22   ;;  %s1589_s22 = sphi %s1677_s22, %s30_s22   ;;  %s1585_s21 = sphi %s1675_s21, %s2243_s21   ;;  %s1581_s20 = sphi %s1673_s20, %s2242_s20   ;;  %s1577_s8 = sphi %s1671_s8, %s2241_s8   ;;  %s1573_s19 = sphi %s1669_s19, %s2240_s19   ;;  %s1569_s5 = sphi %s1667_s5, %s2249_s5   ;;  %s1565_s18 = sphi %s1665_s18, %s2248_s18   ;;  %s1561_s3 = sphi %s1663_s3, %s2247_s3   ;;  %s1557_s17 = sphi %s1661_s17, %s2246_s17   ;;  %s1553_s16 = sphi %s1659_s16, %s2245_s16   ;;  %s1549_s15 = sphi %s1657_s15, %s2244_s15  }
   0xd   : > { %2228 = sst [smem:[#allocation14_spill]] %s1585_s21  ;;  %s1198_s24 = sadd.s32 4294967294, %s1589_s22  }
   0xe   : > { %s39_s25 = sadd.s32 1, %s1581_s20  ;;  %s42_s26 = sadd.s32 1, %s1585_s21 }
   0xf   : > { %p40_p0 = scmp.ge.s32.totalorder %s39_s25, 2  ;;  %s49_s27 = sadd.s32 1, %s1569_s5 }
  0x10   : > { %p56_p1 = scmp.ne.s32.totalorder %s1569_s5, %s1565_s18  ;;  %p57_p2 = scmp.eq.s32.totalorder %s1589_s22, 0 }
  0x11   : > { %s2251_s25 = smov (%p40_p0, %s39_s25), 0  ;;  %s2253_s26 = smov (!%p40_p0, %s42_s26), %s1585_s21 }
  0x12   : > { %2229 = sst [smem:[#allocation15_spill]] %s2251_s25  ;;  %p1721_p3 = por %p57_p2, %p56_p1 }
  0x13   : > { %p62_p4 = scmp.ne.s32.totalorder %s1565_s18, %s1561_s3  ;;  %p44_p5 = scmp.ge.s32.totalorder %s2253_s26, 2 }
  0x14   : > { %p63_p6 = scmp.eq.s32.totalorder %s1197_s23, 0  ;;  %s248_s29 = ssub.s32 %s1581_s20, %s2251_s25 }
  0x15   : > { %s252_s30 = sadd.s32 1, %s1557_s17  ;;  %s2255_s26 = smov (%p44_p5, %s2253_s26), 0 }
  0x16   : > { %2231 = sst [smem:[#allocation16_spill]] %s2255_s26  ;;  %p1731_p7 = por %p63_p6, %p62_p4 }
  0x17   : > { %p262_p8 = scmp.ne.s32.totalorder %s1557_s17, %s1553_s16  ;;  %s46_s11 = ssub.s32 %s1585_s21, %s2255_s26 }
  0x18   : > { %p263_p9 = scmp.eq.s32.totalorder %s1197_s23, 3  ;;  %p47_p10 = scmp.eq.s32.totalorder %s46_s11, 0 }
  0x19   : > { %s249_s12 = sor.u32 %s248_s29, %s46_s11  ;;  %p268_p13 = scmp.ne.s32.totalorder %s1553_s16, %s1549_s15 }
  0x1a   : > { %p250_p11 = scmp.eq.s32.totalorder %s249_s12, 0  ;;  %p1739_p12 = por %p263_p9, %p262_p8 }
  0x1b   : > { %s1744_s14 = scalar_select %p47_p10, %s1569_s5, %s49_s27  }
  0x1c   : > { %s2233_s13 = scalar_select %p1739_p12, 1, 0 }
  0x1d   : > { %s1747_s3 = scalar_select %p250_p11, %s1557_s17, %s252_s30  }
  0x1e   : > { %p269_p0 = scmp.eq.s32.totalorder %s1198_s24, 3  ;;  %p1242_p1 = scmp.lt.s32.totalorder %s1589_s22, 4 }
  0x1f   : > { %s310_s23 = sand.u32 1, %s1569_s5   ;;  %s1221_s11 = sshll.u32 %s1585_s21, 6 }
  0x20   : > { %p1752_p2 = por %p269_p0, %p268_p13  ;;  %s1201_s29 = sshll.u32 %s310_s23, 2 }
  0x21   : > { %s1761_s20 = scalar_lea.hbm %s2212_s0, %s1221_s11  ;;  %s314_s27 = scalar_lea.vmem [#allocation7], %s1201_s29 }
  0x22   : > { %s2234_s26 = scalar_select %p1752_p2, 1, 0 }
  0x23   : > { %s322_s30 = sshll.u32 %s314_s27, 4  ;;  %p1767_p4 = pnand %p1242_p1, %p1721_p3  ;;  %s1763_s30 = int_to_ptr.vmem [resolvable:$true] %s322_s30 }
  0x24   : > { %s311_s25 = scalar_lea.sflag [#allocation8], %s310_s23  ;;  %s1437_s11 = scalar_lea.hbm %s1761_s20, 64 }
  0x25   : > { %p1438_p8 = scmp.ne.s32.totalorder %s1761_s20, %s1437_s11  ;;  %p1439_p9 = pneg %p1767_p4 }
  0x26   : > { %s1442_s28 = scalar_lea.hbm %s2212_s0, 128  ;;  %p1443_p3 = scmp.lt.u32.totalorder %s1761_s20, %s2212_s0 }
  0x27   : > { %p1440_p10 = pnand %p1439_p9, %p1438_p8  ;;  %p1444_p13 = scmp.lt.u32.totalorder %s1442_s28, %s1437_s11 }
  0x28   : > { %p1446_p1 = scmp.lt.u32.totalorder %s1437_s11, %s1761_s20 }
  0x29   : > { %p1441_p11 = pneg %p1440_p10  ;;  %p1445_p0 = por %p1444_p13, %p1443_p3 }
  0x2b   : > { %p1447_p5 = por %p1446_p1, %p1445_p0 }
  0x2d   : > { %p1448_p6 = pnand %p1447_p5, %p1441_p11 }
  0x2f   : > { %1451 = shalt.err (!%p1448_p6)
}
  0x30   : > { %s1452_s23 = scalar_lea.vmem %s1763_s30, 64  ;;  %s1591_s29 = smov [#allocation7]  }
  0x31   : > { %p1453_p8 = scmp.ne.s32.totalorder %s1763_s30, %s1452_s23  ;;  %s1457_s12 = sshll.u32 %s1591_s29, 4  ;;  %s1458_s12 = int_to_ptr.vmem [resolvable:$false] %s1457_s12 }
  0x32   : > { %s1459_s21 = scalar_lea.vmem %s1458_s12, 128  ;;  %p1460_p12 = scmp.lt.s32.totalorder %s1763_s30, %s1458_s12 }
  0x33   : > { %p1455_p10 = pnand %p1453_p8, %p1439_p9  ;;  %p1461_p3 = scmp.lt.s32.totalorder %s1459_s21, %s1452_s23 }
  0x35   : > { %p1456_p2 = pneg %p1455_p10  ;;  %p1462_p13 = por %p1461_p3, %p1460_p12 }
  0x37   : > { %p1463_p0 = pnand %p1462_p13, %p1456_p2 }
  0x39   : > { %1466 = shalt.err (!%p1463_p0)
}
  0x3a   : > { %1237 = dma.hbm_to_vmem [thread:$0]  (!%p1767_p4), %s1761_s20, 64, %s1763_s30, %s311_s25  }
  0x3b   : > { %p2236_p5 = scmp.lt.s32.totalorder %s1589_s22, 5  ;;  %p2237_p6 = scmp.ge.s32.totalorder %s1589_s22, 1 }
  0x3d   : > { %p339_p9 = pnand %p2237_p6, %p2236_p5 }
  0x3e   : > { %s344_s11 = sand.u32 (!%p339_p9), 1, %s1565_s18  }
  0x3f   : > { %342 = sbr.rel (%p339_p9) target bundleno = 1403 (0x57b), region = 56  ;;  %s1205_s28 = sshll.u32 (!%p339_p9), %s344_s11, 2 }
  0x40   : > { %s345_s27 = scalar_lea.sflag (!%p339_p9), [#allocation8], %s344_s11  ;;  %s348_s23 = scalar_lea.vmem (!%p339_p9), [#allocation7], %s1205_s28 }
  0x46   : > { %1540 = dma.done.wait (%p1731_p7), %s345_s27, 64  }
  0x47   : > { %1542 = vsyncadd (%p1731_p7), %s345_s27, 4294967232  ;;  %s388_s20 = sand.u32 1, %s1553_s16   ;;  %p391_p12 = scmp.lt.s32.totalorder %s1577_s8, 1 }
  0x48   : > { %s1811_s30 = sshll.u32 %s388_s20, 2  ;;  %p393_p2 = scmp.lt.s32.totalorder %s1573_s19, 1 }
  0x49   : > { %s392_s24 = scalar_select %p391_p12, %s1577_s8, 1 }
  0x4a   : > { %s394_s25 = scalar_select %p393_p2, %s1573_s19, 1 }
  0x4b   : > { %s1207_s29 = sshll.u32 %s392_s24, 1  ;;  %s390_s27 = scalar_lea.vmem [#allocation10], %s1811_s30 }
  0x4c   : > { %s396_s12 = sadd.s32 %s1207_s29, %s394_s25  ;;  %p1209_p7 = scmp.ne.s32.totalorder %s1573_s19, 0 }
  0x4d   : > { %s1208_s21 = sshll.u32 %s396_s12, 2  ;;  %v1210_v2 = vld.sshfl [vmem:[%s348_s23] sm:$0x33 pattern:$0x76325410] (!%p1209_p7)  ;;  %vm429_vm0 = vcmask (!%p1209_p7), 1041408   ;;  %v412_v10 = vlaneseq (!%p1209_p7) }
  0x4e   : > { %s1819_s28 = scalar_lea.vmem %s2213_s1, %s1208_s21  ;;  %403 = sbr.rel (%p1209_p7) target bundleno = 306 (0x132), region = 64  ;;  %v424_v3 = vcombine.high (!%p1209_p7), %v1210_v2, %v1210_v2  ;;  %v431_v4 = vsel (!%p1209_p7), %vm429_vm0, %v1210_v2, 0  ;;  %v1592_v5 = vmov (!%p1209_p7), 0   ;;  %v406_v6 = vld [vmem:[#allocation5] sm:$0x1] (!%p1209_p7)  ;;  %vm425_vm1 = vcmask (!%p1209_p7), 31744  }
  0x4f   : > { %468 = vmatprep.mubr.bf16.mxu0 (!%p1209_p7), %v1592_v5  ;;  %542 = vmatprep.mubr.bf16.mxu1 (!%p1209_p7), %v1592_v5  ;;  %v405_v7 = vld [vmem:[%s2216_s4] sm:$0x1] (!%p1209_p7)  ;;  %v413_v11 = vshrl.u32 (!%p1209_p7), %v412_v10, 7  ;;  %v1593_v14 = vmov (!%p1209_p7), 1966171168   ;;  %vm497_vm2 = vcmp.lt.s32.totalorder (!%p1209_p7), %v412_v10, 256 }
  0x50   : > { %1337 = vset.pattern.permute.xlu0 (!%p1209_p7), %v1592_v5  ;;  %1211 = vmatprep.subr.msk.bf16.mxu0 (!%p1209_p7), %vm429_vm0, %v424_v3  ;;  %v500_v8 = vld [vmem:[%s2217_s6] sm:$0x3] (!%p1209_p7)  ;;  %v481_v15 = vunpack.c.l.s4 (!%p1209_p7), %v1593_v14 }
  0x51   : > { %1213 = vmatprep.subr.msk.bf16.mxu1 (!%p1209_p7), %vm429_vm0, %v424_v3  ;;  %437 = vmatpush1.bf16.msra.mxu0 (!%p1209_p7), %v431_v4  ;;  %v501_v9 = vld [vmem:[%s2218_s7] sm:$0xf] (!%p1209_p7)  ;;  %v414_v13 = vsub.s32 (!%p1209_p7), 0, %v413_v11 }
  0x52   : > { %511 = vmatpush1.bf16.msra.mxu1 (!%p1209_p7), %v431_v4  ;;  %409 = vperm.xlu0 (!%p1209_p7), %1337, %v406_v6   ;;  %v482_v18 = vunpack.c.0.s8 (!%p1209_p7), %v481_v15 }
  0x54   : > { %1212 = vmatmul.mubr.msk.bf16.vlgmr.msra.gmra.mrb[0].mxu0 (!%p1209_p7), %vm425_vm1, %v405_v7  ;;  %v485_v26 = vsub.s32 (!%p1209_p7), %v482_v18, %v413_v11 }
  0x55   : > { %1214 = vmatmul.mubr.msk.bf16.vlgmr.msra.gmra.mrb[0].mxu1 %vm425_vm1, %v500_v8 }
  0x56   : > { %504 = vperm.xlu0 %1337, %v501_v9  }
  0xd1   : > { %v410_v12 = vpop.permute.xlu0 %409 }
  0xd2   : > { %v415_v16 = vrot.slane %v410_v12, %v414_v13 }
  0xd5   : > { %v505_v17 = vpop.permute.xlu0 %504 }
 0x127   : > { %v470_v19 = vpop.f32.mrb[0].mxu0 }
 0x128   : > { %v544_v20 = vpop.f32.mrb[0].mxu1  ;;  %v471_v21 = vadd.f32 %v470_v19, %v415_v16  ;;  %v472_v23 = vpop.f32.mrb[1].mxu0 }
 0x129   : > { %v545_v22 = vadd.f32 %v544_v20, %v505_v17  ;;  %v546_v24 = vpop.f32.mrb[1].mxu1  ;;  %v473_v25 = vadd.f32 %v472_v23, %v415_v16  ;;  %v474_v28 = vpop.f32.mrb[2].mxu0 }
 0x12a   : > { %v547_v27 = vadd.f32 %v546_v24, %v505_v17  ;;  %v548_v29 = vpop.f32.mrb[2].mxu1  ;;  %v475_v30 = vpop.f32.mrb[3].mxu0 }
 0x12b   : > { %v549_v31 = vpop.f32.mrb[3].mxu1  ;;  %v479_v32 = vcombine.low %v471_v21, %v473_v25 }
 0x12c   : > { %v553_v33 = vcombine.low %v545_v22, %v547_v27 }
 0x12d   : > { %v486_v34 = vrot.slane %v479_v32, %v485_v26 }
 0x12e   : > { %555 = vst [vmem:[#allocation3] sm:$0xff] %v553_v33 }
 0x12f   : > { %v493_v35 = vrot.slane %v486_v34, %v485_v26 }
 0x131   : > { %499 = vst.msk [vmem:[#allocation2] sm:$0x3] %vm497_vm2, %v493_v35 }
 0x132 PF: > { %v1833_v36 = vld [vmem:[%s1819_s28] sm:$0xf]  ;;  %vm573_vm3 = vcmask 1041408   ;;  %v1594_v37 = vmov 0.0   ;;  %vm1595_vm4 = vmmov 0   ;;  %v1596_v40 = vmov 0  }
 0x133   : > { %1224 = vmatprep.subr.bf16.mxu0 %v1594_v37  ;;  %v558_v38 = vpack.c.bf16 %v1833_v36, %v1833_v36  ;;  %1226 = vmatprep.mubr.msk.bf16.mxu0 %vm1595_vm4, %v1594_v37  ;;  %v559_v39 = vld [vmem:[#allocation4] sm:$0x1]  ;;  %v557_v42 = vld [vmem:[%s2214_s2] sm:$0x1]  ;;  %vm569_vm5 = vcmask 31744   ;;  %v565_v43 = vlaneseq  ;;  %s1075_s28 = sld [smem:[#allocation6]] }
 0x134   : > { %1338 = vset.pattern.permute.xlu0 %v1596_v40  ;;  %1339 = vset.pattern.permute.xlu1 %v1596_v40  ;;  %s1217_s24 = sshll.u32 %s1577_s8, 1  ;;  %s1096_s12 = sshll.u32 %s390_s27, 4  ;;  %s2148_s12 = int_to_ptr.vmem [resolvable:$true] %s1096_s12 }
 0x135   : > { %v575_v41 = vsel %vm573_vm3, %v558_v38, 0  ;;  %562 = vperm.xlu0 %1338, %v559_v39   ;;  %v566_v44 = vshrl.u32 %v565_v43, 7  ;;  %s1092_s25 = sadd.s32 %s1573_s19, %s1217_s24  ;;  %s1081_s19 = scalar_lea.sflag [#allocation9], %s388_s20 }
 0x136   : > { %1225 = vmatpush3.bf16.msra.mxu0 %v575_v41  ;;  %s1218_s29 = sshll.u32 %s1092_s25, 6  ;;  %s1467_s8 = scalar_lea.vmem %s2148_s12, 64 }
 0x137   : > { %v567_v45 = vsub.s32 0, %v566_v44  ;;  %v738_v5 = vsub.s32 1, %v566_v44  ;;  %s2146_s10 = scalar_lea.hbm %s2220_s9, %s1218_s29  ;;  %p1468_p4 = scmp.ne.s32.totalorder %s2148_s12, %s1467_s8 }
 0x138   : > { %v617_v6 = vld [vmem:[#allocation2] sm:$0x3]  ;;  %p2238_p11 = scmp.ne.s32.totalorder %s2233_s13, 0  ;;  %s1597_s11 = smov [#allocation10]  }
 0x139   : > { %1227 = vmatmul.mubr.msk.bf16.vlgmr.msra.gmra.mrb[0].mxu0 %vm569_vm5, %v557_v42  ;;  %v1840_v7 = vrot.slane %v617_v6, %v567_v45  ;;  %v1842_v8 = vrot.slane %v617_v6, %v738_v5 }
 0x13a   : > { %p1469_p1 = pnand %p1468_p4, %p2238_p11 }
 0x13c   : > { %p1470_p8 = pneg %p1469_p1 }
 0x1b4   : > { %v563_v46 = vpop.permute.xlu0 %562 }
 0x1b5   : > { %v568_v47 = vrot.slane %v563_v46, %v567_v45 }
 0x20c   : > { %v611_v48 = vpop.f32.mrb[0].mxu0 }
 0x20d   : > { %v612_v49 = vadd.f32 %v611_v48, %v568_v47  ;;  %v1228_v50 = vpop.f32.mrb[1].mxu0 }
 0x20e   : > { %v614_v51 = vpop.f32.mrb[2].mxu0 }
 0x20f   : > { %619 = vxpose.xlu0.b32.start.end [1/1] (short) %v612_v49, 128  ;;  %v1229_v52 = vpop.f32.mrb[3].mxu0 }
 0x28f   : > { %v635_v53 = vpop.trf.xlu0 }
 0x290   : > { %653 = vperm.xlu1 %1339, %v635_v53  }
 0x293   : > { %v636_v54 = vpop.trf.xlu0 }
 0x294   : > { %658 = vperm.xlu1 %1339, %v636_v54  }
 0x297   : > { %v637_v55 = vpop.trf.xlu0 }
 0x298   : > { %663 = vperm.xlu1 %1339, %v637_v55  }
 0x29b   : > { %v638_v56 = vpop.trf.xlu0 }
 0x29c   : > { %668 = vperm.xlu1 %1339, %v638_v56  }
 0x29f   : > { %v639_v57 = vpop.trf.xlu0 }
 0x2a0   : > { %673 = vperm.xlu1 %1339, %v639_v57  }
 0x2a3   : > { %v640_v58 = vpop.trf.xlu0 }
 0x2a4   : > { %678 = vperm.xlu1 %1339, %v640_v58  }
 0x2a7   : > { %v641_v59 = vpop.trf.xlu0 }
 0x2a8   : > { %683 = vperm.xlu1 %1339, %v641_v59  }
 0x2ab   : > { %v642_v60 = vpop.trf.xlu0 }
 0x2ac   : > { %688 = vperm.xlu1 %1339, %v642_v60  }
 0x2af   : > { %v643_v61 = vpop.trf.xlu0 }
 0x2b0   : > { %693 = vperm.xlu1 %1339, %v643_v61  }
 0x2b3   : > { %v644_v62 = vpop.trf.xlu0 }
 0x2b4   : > { %698 = vperm.xlu0 %1338, %v644_v62  }
 0x2b7   : > { %v645_v63 = vpop.trf.xlu0 }
 0x2b8   : > { %703 = vperm.xlu1 %1339, %v645_v63  }
 0x2bb   : > { %v646_v0 = vpop.trf.xlu0 }
 0x2bc   : > { %708 = vperm.xlu1 %1339, %v646_v0  }
 0x2bf   : > { %v647_v1 = vpop.trf.xlu0 }
 0x2c0   : > { %713 = vperm.xlu1 %1339, %v647_v1  }
 0x2c3   : > { %v648_v2 = vpop.trf.xlu0 }
 0x2c4   : > { %718 = vperm.xlu1 %1339, %v648_v2  }
 0x2c7   : > { %v649_v3 = vpop.trf.xlu0 }
 0x2c8   : > { %723 = vperm.xlu1 %1339, %v649_v3  }
 0x2cb   : > { %v650_v4 = vpop.trf.xlu0 }
 0x2cc   : > { %728 = vperm.xlu1 %1339, %v650_v4  }
 0x30f   : > { %v654_v9 = vpop.permute.xlu1 %653 }
 0x310   : > { %v1845_v10 = vmul.f32 %v1840_v7, %v654_v9  ;;  %v1848_v11 = vmul.f32 %v1842_v8, %v654_v9 }
 0x312   : > { %v774_v12 = vmax.f32 %v1845_v10, %v1848_v11 }
 0x313   : > { %v659_v13 = vpop.permute.xlu1 %658 }
 0x314   : > { %v1853_v14 = vmul.f32 %v1840_v7, %v659_v13  ;;  %v1856_v15 = vmul.f32 %v1842_v8, %v659_v13  ;;  %775 = vmax.xlane.f32.xlu1 %v774_v12 }
 0x316   : > { %v777_v16 = vmax.f32 %v1853_v14, %v1856_v15 }
 0x317   : > { %v664_v17 = vpop.permute.xlu1 %663 }
 0x318   : > { %v1861_v18 = vmul.f32 %v1840_v7, %v664_v17  ;;  %v1864_v19 = vmul.f32 %v1842_v8, %v664_v17  ;;  %778 = vmax.xlane.f32.xlu1 %v777_v16 }
 0x31a   : > { %v780_v20 = vmax.f32 %v1861_v18, %v1864_v19 }
 0x31b   : > { %v669_v21 = vpop.permute.xlu1 %668 }
 0x31c   : > { %v1869_v22 = vmul.f32 %v1840_v7, %v669_v21  ;;  %v1872_v23 = vmul.f32 %v1842_v8, %v669_v21  ;;  %781 = vmax.xlane.f32.xlu1 %v780_v20 }
 0x31e   : > { %v783_v24 = vmax.f32 %v1869_v22, %v1872_v23 }
 0x31f   : > { %v674_v25 = vpop.permute.xlu1 %673 }
 0x320   : > { %v1877_v26 = vmul.f32 %v1840_v7, %v674_v25  ;;  %v1880_v27 = vmul.f32 %v1842_v8, %v674_v25  ;;  %784 = vmax.xlane.f32.xlu1 %v783_v24 }
 0x322   : > { %v786_v28 = vmax.f32 %v1877_v26, %v1880_v27 }
 0x323   : > { %v679_v29 = vpop.permute.xlu1 %678 }
 0x324   : > { %v1885_v30 = vmul.f32 %v1840_v7, %v679_v29  ;;  %v1888_v31 = vmul.f32 %v1842_v8, %v679_v29  ;;  %787 = vmax.xlane.f32.xlu1 %v786_v28 }
 0x326   : > { %v789_v32 = vmax.f32 %v1885_v30, %v1888_v31 }
 0x327   : > { %v684_v33 = vpop.permute.xlu1 %683 }
 0x328   : > { %v1893_v34 = vmul.f32 %v1840_v7, %v684_v33  ;;  %v1896_v35 = vmul.f32 %v1842_v8, %v684_v33  ;;  %790 = vmax.xlane.f32.xlu1 %v789_v32 }
 0x32a   : > { %v792_v37 = vmax.f32 %v1893_v34, %v1896_v35 }
 0x32b   : > { %v689_v38 = vpop.permute.xlu1 %688 }
 0x32c   : > { %v1901_v39 = vmul.f32 %v1840_v7, %v689_v38  ;;  %v1904_v40 = vmul.f32 %v1842_v8, %v689_v38  ;;  %793 = vmax.xlane.f32.xlu1 %v792_v37 }
 0x32e   : > { %v795_v41 = vmax.f32 %v1901_v39, %v1904_v40 }
 0x32f   : > { %v694_v42 = vpop.permute.xlu1 %693 }
 0x330   : > { %v1909_v43 = vmul.f32 %v1840_v7, %v694_v42  ;;  %v1912_v44 = vmul.f32 %v1842_v8, %v694_v42  ;;  %796 = vmax.xlane.f32.xlu1 %v795_v41 }
 0x332   : > { %v798_v45 = vmax.f32 %v1909_v43, %v1912_v44 }
 0x333   : > { %v699_v46 = vpop.permute.xlu0 %698 }
 0x334   : > { %v1917_v47 = vmul.f32 %v1840_v7, %v699_v46  ;;  %v1920_v48 = vmul.f32 %v1842_v8, %v699_v46  ;;  %799 = vmax.xlane.f32.xlu1 %v798_v45 }
 0x336   : > { %v801_v49 = vmax.f32 %v1917_v47, %v1920_v48 }
 0x337   : > { %v704_v50 = vpop.permute.xlu1 %703 }
 0x338   : > { %v1925_v51 = vmul.f32 %v1840_v7, %v704_v50  ;;  %v1928_v52 = vmul.f32 %v1842_v8, %v704_v50  ;;  %802 = vmax.xlane.f32.xlu1 %v801_v49 }
 0x33a   : > { %v804_v53 = vmax.f32 %v1925_v51, %v1928_v52 }
 0x33b   : > { %v709_v54 = vpop.permute.xlu1 %708 }
 0x33c   : > { %v1933_v55 = vmul.f32 %v1840_v7, %v709_v54  ;;  %v1936_v56 = vmul.f32 %v1842_v8, %v709_v54  ;;  %805 = vmax.xlane.f32.xlu1 %v804_v53 }
 0x33e   : > { %v807_v57 = vmax.f32 %v1933_v55, %v1936_v56 }
 0x33f   : > { %v714_v58 = vpop.permute.xlu1 %713 }
 0x340   : > { %v1941_v59 = vmul.f32 %v1840_v7, %v714_v58  ;;  %v1944_v60 = vmul.f32 %v1842_v8, %v714_v58  ;;  %808 = vmax.xlane.f32.xlu0 %v807_v57 }
 0x342   : > { %v810_v61 = vmax.f32 %v1941_v59, %v1944_v60 }
 0x343   : > { %v719_v62 = vpop.permute.xlu1 %718 }
 0x344   : > { %v1949_v63 = vmul.f32 %v1840_v7, %v719_v62  ;;  %v1952_v0 = vmul.f32 %v1842_v8, %v719_v62  ;;  %811 = vmax.xlane.f32.xlu1 %v810_v61 }
 0x346   : > { %v813_v1 = vmax.f32 %v1949_v63, %v1952_v0 }
 0x347   : > { %v724_v2 = vpop.permute.xlu1 %723 }
 0x348   : > { %v1957_v3 = vmul.f32 %v1840_v7, %v724_v2  ;;  %v1960_v4 = vmul.f32 %v1842_v8, %v724_v2  ;;  %814 = vmax.xlane.f32.xlu1 %v813_v1 }
 0x34a   : > { %v816_v5 = vmax.f32 %v1957_v3, %v1960_v4 }
 0x34b   : > { %v729_v6 = vpop.permute.xlu1 %728 }
 0x34c   : > { %v1965_v9 = vmul.f32 %v1840_v7, %v729_v6  ;;  %v1968_v12 = vmul.f32 %v1842_v8, %v729_v6  ;;  %817 = vmax.xlane.f32.xlu1 %v816_v5 }
 0x34e   : > { %v819_v13 = vmax.f32 %v1965_v9, %v1968_v12 }
 0x350   : > { %820 = vmax.xlane.f32.xlu1 %v819_v13 }
 0x3a1   : > { %v776_v16 = vpop.xlane.xlu1 %775 }
 0x3a2   : > { %v822_v17 = vsub.f32 %v1845_v10, %v776_v16  ;;  %v823_v20 = vsub.f32 %v1848_v11, %v776_v16 }
 0x3a4   : > { %v854_v21 = vmul.f32 1.442695, %v822_v17  ;;  %v856_v24 = vmul.f32 1.442695, %v823_v20 }
 0x3a5   : > { %v779_v25 = vpop.xlane.xlu1 %778 }
 0x3a6   : > { %1341 = vpow2.f32 %v854_v21  ;;  %v824_v7 = vsub.f32 %v1853_v14, %v779_v25  ;;  %v825_v28 = vsub.f32 %v1856_v15, %v779_v25 }
 0x3a7   : > { %1343 = vpow2.f32 %v856_v24 }
 0x3a8   : > { %v858_v8 = vmul.f32 1.442695, %v824_v7  ;;  %v860_v29 = vmul.f32 1.442695, %v825_v28 }
 0x3a9   : > { %v782_v32 = vpop.xlane.xlu1 %781 }
 0x3aa   : > { %1345 = vpow2.f32 %v858_v8  ;;  %v826_v33 = vsub.f32 %v1861_v18, %v782_v32  ;;  %v827_v37 = vsub.f32 %v1864_v19, %v782_v32 }
 0x3ab   : > { %1347 = vpow2.f32 %v860_v29 }
 0x3ac   : > { %v862_v10 = vmul.f32 1.442695, %v826_v33  ;;  %v864_v11 = vmul.f32 1.442695, %v827_v37 }
 0x3ad   : > { %v785_v38 = vpop.xlane.xlu1 %784 }
 0x3ae   : > { %1349 = vpow2.f32 %v862_v10  ;;  %v828_v41 = vsub.f32 %v1869_v22, %v785_v38  ;;  %v829_v14 = vsub.f32 %v1872_v23, %v785_v38 }
 0x3af   : > { %1351 = vpow2.f32 %v864_v11 }
 0x3b0   : > { %v1980_v15 = vpop.eup %1341  ;;  %v866_v42 = vmul.f32 1.442695, %v828_v41  ;;  %v868_v45 = vmul.f32 1.442695, %v829_v14 }
 0x3b1   : > { %v1982_v46 = vpop.eup %1343  ;;  %v788_v49 = vpop.xlane.xlu1 %787 }
 0x3b2   : > { %1353 = vpow2.f32 %v866_v42  ;;  %v830_v18 = vsub.f32 %v1877_v26, %v788_v49  ;;  %v831_v19 = vsub.f32 %v1880_v27, %v788_v49  ;;  %v918_v50 = vadd.f32 %v1982_v46, %v1980_v15 }
 0x3b3   : > { %1355 = vpow2.f32 %v868_v45 }
 0x3b4   : > { %v1988_v22 = vpop.eup %1345  ;;  %v870_v23 = vmul.f32 1.442695, %v830_v18  ;;  %v872_v53 = vmul.f32 1.442695, %v831_v19  ;;  %919 = vadd.xlane.f32.xlu1 %v918_v50 }
 0x3b5   : > { %v1990_v54 = vpop.eup %1347  ;;  %v791_v57 = vpop.xlane.xlu1 %790 }
 0x3b6   : > { %1357 = vpow2.f32 %v870_v23  ;;  %v832_v58 = vsub.f32 %v1885_v30, %v791_v57  ;;  %v833_v61 = vsub.f32 %v1888_v31, %v791_v57  ;;  %v921_v26 = vadd.f32 %v1990_v54, %v1988_v22 }
 0x3b7   : > { %1359 = vpow2.f32 %v872_v53 }
 0x3b8   : > { %v1996_v27 = vpop.eup %1349  ;;  %v874_v62 = vmul.f32 1.442695, %v832_v58  ;;  %v876_v1 = vmul.f32 1.442695, %v833_v61  ;;  %922 = vadd.xlane.f32.xlu1 %v921_v26 }
 0x3b9   : > { %v1998_v2 = vpop.eup %1351  ;;  %v794_v5 = vpop.xlane.xlu1 %793 }
 0x3ba   : > { %1361 = vpow2.f32 %v874_v62  ;;  %v834_v6 = vsub.f32 %v1893_v34, %v794_v5  ;;  %v835_v13 = vsub.f32 %v1896_v35, %v794_v5  ;;  %v924_v30 = vadd.f32 %v1998_v2, %v1996_v27 }
 0x3bb   : > { %1363 = vpow2.f32 %v876_v1 }
 0x3bc   : > { %v2004_v31 = vpop.eup %1353  ;;  %v878_v16 = vmul.f32 1.442695, %v834_v6  ;;  %v880_v17 = vmul.f32 1.442695, %v835_v13  ;;  %925 = vadd.xlane.f32.xlu1 %v924_v30 }
 0x3bd   : > { %v2006_v20 = vpop.eup %1355  ;;  %v797_v21 = vpop.xlane.xlu1 %796 }
 0x3be   : > { %1365 = vpow2.f32 %v878_v16  ;;  %v836_v24 = vsub.f32 %v1901_v39, %v797_v21  ;;  %v837_v25 = vsub.f32 %v1904_v40, %v797_v21  ;;  %v927_v34 = vadd.f32 %v2006_v20, %v2004_v31 }
 0x3bf   : > { %1367 = vpow2.f32 %v880_v17 }
 0x3c0   : > { %v2012_v35 = vpop.eup %1357  ;;  %v882_v7 = vmul.f32 1.442695, %v836_v24  ;;  %v884_v28 = vmul.f32 1.442695, %v837_v25  ;;  %928 = vadd.xlane.f32.xlu1 %v927_v34 }
 0x3c1   : > { %v2014_v8 = vpop.eup %1359  ;;  %v800_v29 = vpop.xlane.xlu1 %799 }
 0x3c2   : > { %1369 = vpow2.f32 %v882_v7  ;;  %v838_v32 = vsub.f32 %v1909_v43, %v800_v29  ;;  %v839_v33 = vsub.f32 %v1912_v44, %v800_v29  ;;  %v930_v39 = vadd.f32 %v2014_v8, %v2012_v35 }
 0x3c3   : > { %1371 = vpow2.f32 %v884_v28 }
 0x3c4   : > { %v2020_v40 = vpop.eup %1361  ;;  %v886_v37 = vmul.f32 1.442695, %v838_v32  ;;  %v888_v10 = vmul.f32 1.442695, %v839_v33  ;;  %931 = vadd.xlane.f32.xlu0 %v930_v39 }
 0x3c5   : > { %v2022_v11 = vpop.eup %1363  ;;  %v803_v38 = vpop.xlane.xlu1 %802 }
 0x3c6   : > { %1373 = vpow2.f32 %v886_v37  ;;  %v840_v41 = vsub.f32 %v1917_v47, %v803_v38  ;;  %v841_v14 = vsub.f32 %v1920_v48, %v803_v38  ;;  %v933_v43 = vadd.f32 %v2022_v11, %v2020_v40 }
 0x3c7   : > { %1375 = vpow2.f32 %v888_v10 }
 0x3c8   : > { %v2028_v44 = vpop.eup %1365  ;;  %v890_v42 = vmul.f32 1.442695, %v840_v41  ;;  %v892_v45 = vmul.f32 1.442695, %v841_v14  ;;  %934 = vadd.xlane.f32.xlu1 %v933_v43 }
 0x3c9   : > { %v2030_v49 = vpop.eup %1367  ;;  %v806_v18 = vpop.xlane.xlu1 %805 }
 0x3ca   : > { %1377 = vpow2.f32 %v890_v42  ;;  %v842_v19 = vsub.f32 %v1925_v51, %v806_v18  ;;  %v843_v50 = vsub.f32 %v1928_v52, %v806_v18  ;;  %v936_v47 = vadd.f32 %v2030_v49, %v2028_v44 }
 0x3cb   : > { %1379 = vpow2.f32 %v892_v45 }
 0x3cc   : > { %v2036_v48 = vpop.eup %1369  ;;  %v894_v23 = vmul.f32 1.442695, %v842_v19  ;;  %v896_v53 = vmul.f32 1.442695, %v843_v50  ;;  %937 = vadd.xlane.f32.xlu0 %v936_v47 }
 0x3cd   : > { %v2038_v57 = vpop.eup %1371  ;;  %v809_v58 = vpop.xlane.xlu0 %808 }
 0x3ce   : > { %1381 = vpow2.f32 %v894_v23  ;;  %v844_v61 = vsub.f32 %v1933_v55, %v809_v58  ;;  %v845_v26 = vsub.f32 %v1936_v56, %v809_v58  ;;  %v939_v51 = vadd.f32 %v2038_v57, %v2036_v48 }
 0x3cf   : > { %1383 = vpow2.f32 %v896_v53 }
 0x3d0   : > { %v2044_v52 = vpop.eup %1373  ;;  %v898_v62 = vmul.f32 1.442695, %v844_v61  ;;  %v900_v1 = vmul.f32 1.442695, %v845_v26  ;;  %940 = vadd.xlane.f32.xlu1 %v939_v51  ;;  %v2100_v51 = vld [vmem:[#allocation3] sm:$0xff] }
 0x3d1   : > { %v2046_v5 = vpop.eup %1375  ;;  %v812_v6 = vpop.xlane.xlu1 %811 }
 0x3d2   : > { %1385 = vpow2.f32 %v898_v62  ;;  %v846_v13 = vsub.f32 %v1941_v59, %v812_v6  ;;  %v847_v30 = vsub.f32 %v1944_v60, %v812_v6  ;;  %v942_v55 = vadd.f32 %v2046_v5, %v2044_v52 }
 0x3d3   : > { %1387 = vpow2.f32 %v900_v1  ;;  %v1015_v62 = vcombine.high %v2100_v51, %v2100_v51 }
 0x3d4   : > { %v2052_v56 = vpop.eup %1377  ;;  %v902_v16 = vmul.f32 1.442695, %v846_v13  ;;  %v904_v17 = vmul.f32 1.442695, %v847_v30  ;;  %943 = vadd.xlane.f32.xlu0 %v942_v55 }
 0x3d5   : > { %v2054_v21 = vpop.eup %1379  ;;  %v815_v24 = vpop.xlane.xlu1 %814  ;;  %v1018_v1 = vpack.c.bf16 %v1015_v62, %v1015_v62 }
 0x3d6   : > { %1389 = vpow2.f32 %v902_v16  ;;  %v848_v25 = vsub.f32 %v1949_v63, %v815_v24  ;;  %v849_v34 = vsub.f32 %v1952_v0, %v815_v24  ;;  %v945_v59 = vadd.f32 %v2054_v21, %v2052_v56 }
 0x3d7   : > { %1391 = vpow2.f32 %v904_v17  ;;  %1067 = vmatprep.mubr.bf16.mxu1 %v1018_v1 }
 0x3d8   : > { %v2060_v60 = vpop.eup %1381  ;;  %v906_v7 = vmul.f32 1.442695, %v848_v25  ;;  %v908_v28 = vmul.f32 1.442695, %v849_v34  ;;  %946 = vadd.xlane.f32.xlu1 %v945_v59 }
 0x3d9   : > { %v2062_v29 = vpop.eup %1383  ;;  %v818_v32 = vpop.xlane.xlu1 %817 }
 0x3da   : > { %1393 = vpow2.f32 %v906_v7  ;;  %v850_v33 = vsub.f32 %v1957_v3, %v818_v32  ;;  %v851_v39 = vsub.f32 %v1960_v4, %v818_v32  ;;  %v948_v63 = vadd.f32 %v2062_v29, %v2060_v60 }
 0x3db   : > { %1395 = vpow2.f32 %v908_v28 }
 0x3dc   : > { %v2068_v0 = vpop.eup %1385  ;;  %v910_v37 = vmul.f32 1.442695, %v850_v33  ;;  %v912_v10 = vmul.f32 1.442695, %v851_v39  ;;  %949 = vadd.xlane.f32.xlu0 %v948_v63 }
 0x3dd   : > { %v2070_v38 = vpop.eup %1387  ;;  %v821_v41 = vpop.xlane.xlu1 %820 }
 0x3de   : > { %1397 = vpow2.f32 %v910_v37  ;;  %v852_v14 = vsub.f32 %v1965_v9, %v821_v41  ;;  %v853_v43 = vsub.f32 %v1968_v12, %v821_v41  ;;  %v951_v3 = vadd.f32 %v2070_v38, %v2068_v0 }
 0x3df   : > { %1399 = vpow2.f32 %v912_v10 }
 0x3e0   : > { %v2076_v4 = vpop.eup %1389  ;;  %v914_v42 = vmul.f32 1.442695, %v852_v14  ;;  %v916_v45 = vmul.f32 1.442695, %v853_v43  ;;  %952 = vadd.xlane.f32.xlu1 %v951_v3 }
 0x3e1   : > { %v2078_v18 = vpop.eup %1391 }
 0x3e2   : > { %1401 = vpow2.f32 %v914_v42  ;;  %v954_v19 = vadd.f32 %v2078_v18, %v2076_v4 }
 0x3e3   : > { %1403 = vpow2.f32 %v916_v45 }
 0x3e4   : > { %v2082_v50 = vpop.eup %1393  ;;  %955 = vadd.xlane.f32.xlu0 %v954_v19 }
 0x3e5   : > { %v2084_v9 = vpop.eup %1395 }
 0x3e6   : > { %v957_v12 = vadd.f32 %v2084_v9, %v2082_v50 }
 0x3e8   : > { %v2088_v47 = vpop.eup %1397  ;;  %958 = vadd.xlane.f32.xlu1 %v957_v12 }
 0x3e9   : > { %v2090_v23 = vpop.eup %1399 }
 0x3ea   : > { %v960_v53 = vadd.f32 %v2090_v23, %v2088_v47 }
 0x3ec   : > { %v2094_v58 = vpop.eup %1401  ;;  %961 = vadd.xlane.f32.xlu0 %v960_v53 }
 0x3ed   : > { %v2096_v61 = vpop.eup %1403 }
 0x3ee   : > { %v963_v26 = vadd.f32 %v2096_v61, %v2094_v58 }
 0x3f0   : > { %964 = vadd.xlane.f32.xlu1 %v963_v26 }
 0x441   : > { %v920_v6 = vpop.xlane.xlu1 %919 }
 0x442   : > { %1405 = vrcp.f32 %v920_v6 }
 0x445   : > { %v923_v13 = vpop.xlane.xlu1 %922 }
 0x446   : > { %1407 = vrcp.f32 %v923_v13 }
 0x449   : > { %v926_v30 = vpop.xlane.xlu1 %925 }
 0x44a   : > { %1409 = vrcp.f32 %v926_v30 }
 0x44c   : > { %v1406_v16 = vpop.eup %1405 }
 0x44d   : > { %v929_v55 = vpop.xlane.xlu1 %928  ;;  %v983_v25 = vmul.f32 %v1406_v16, %v1982_v46  ;;  %v982_v59 = vmul.f32 %v1406_v16, %v1980_v15 }
 0x44e   : > { %1411 = vrcp.f32 %v929_v55 }
 0x450   : > { %v1408_v17 = vpop.eup %1407 }
 0x451   : > { %v932_v24 = vpop.xlane.xlu0 %931  ;;  %v985_v34 = vmul.f32 %v1408_v17, %v1990_v54  ;;  %v984_v7 = vmul.f32 %v1408_v17, %v1988_v22 }
 0x452   : > { %1413 = vrcp.f32 %v932_v24 }
 0x453   : > { %v1020_v28 = vpack.c.bf16 %v985_v34, %v983_v25  ;;  %v1019_v32 = vpack.c.bf16 %v984_v7, %v982_v59 }
 0x454   : > { %v1410_v39 = vpop.eup %1409 }
 0x455   : > { %1035 = vmatprep.subr.bf16.mxu1 %v1020_v28  ;;  %v935_v33 = vpop.xlane.xlu1 %934  ;;  %v987_v10 = vmul.f32 %v1410_v39, %v1998_v2  ;;  %v986_v54 = vmul.f32 %v1410_v39, %v1996_v27 }
 0x456   : > { %1415 = vrcp.f32 %v935_v33  ;;  %1036 = vmatpush1.bf16.xpose.msra.mxu1 %v1019_v32 }
 0x458   : > { %v1412_v63 = vpop.eup %1411 }
 0x459   : > { %v938_v37 = vpop.xlane.xlu0 %937  ;;  %v989_v46 = vmul.f32 %v1412_v63, %v2006_v20  ;;  %v988_v15 = vmul.f32 %v1412_v63, %v2004_v31 }
 0x45a   : > { %1417 = vrcp.f32 %v938_v37 }
 0x45b   : > { %v1022_v41 = vpack.c.bf16 %v989_v46, %v987_v10  ;;  %v1021_v22 = vpack.c.bf16 %v988_v15, %v986_v54 }
 0x45c   : > { %v1414_v43 = vpop.eup %1413 }
 0x45d   : > { %1037 = vmatprep.subr.bf16.mxu1 %v1022_v41  ;;  %v941_v14 = vpop.xlane.xlu1 %940  ;;  %v991_v45 = vmul.f32 %v1414_v43, %v2014_v8  ;;  %v990_v20 = vmul.f32 %v1414_v43, %v2012_v35 }
 0x45e   : > { %1419 = vrcp.f32 %v941_v14  ;;  %1038 = vmatpush1.bf16.xpose.msra.mxu1 %v1021_v22 }
 0x460   : > { %v1416_v3 = vpop.eup %1415 }
 0x461   : > { %v944_v42 = vpop.xlane.xlu0 %943  ;;  %v993_v2 = vmul.f32 %v1416_v3, %v2022_v11  ;;  %v992_v27 = vmul.f32 %v1416_v3, %v2020_v40 }
 0x462   : > { %1421 = vrcp.f32 %v944_v42 }
 0x463   : > { %v1024_v19 = vpack.c.bf16 %v993_v2, %v991_v45  ;;  %v1023_v31 = vpack.c.bf16 %v992_v27, %v990_v20 }
 0x464   : > { %v1418_v53 = vpop.eup %1417 }
 0x465   : > { %v947_v12 = vpop.xlane.xlu1 %946  ;;  %1039 = vmatprep.subr.bf16.mxu1 %v1024_v19  ;;  %v995_v1 = vmul.f32 %v1418_v53, %v2030_v49  ;;  %v994_v11 = vmul.f32 %v1418_v53, %v2028_v44 }
 0x466   : > { %1423 = vrcp.f32 %v947_v12  ;;  %1040 = vmatpush1.bf16.xpose.msra.mxu1 %v1023_v31 }
 0x468   : > { %v1420_v26 = vpop.eup %1419 }
 0x469   : > { %v950_v62 = vpop.xlane.xlu0 %949  ;;  %v997_v8 = vmul.f32 %v1420_v26, %v2038_v57  ;;  %v996_v35 = vmul.f32 %v1420_v26, %v2036_v48 }
 0x46a   : > { %1425 = vrcp.f32 %v950_v62 }
 0x46b   : > { %v1026_v6 = vpack.c.bf16 %v997_v8, %v995_v1  ;;  %v1025_v40 = vpack.c.bf16 %v996_v35, %v994_v11 }
 0x46c   : > { %v1422_v30 = vpop.eup %1421 }
 0x46d   : > { %v953_v13 = vpop.xlane.xlu1 %952  ;;  %1041 = vmatprep.subr.bf16.mxu1 %v1026_v6  ;;  %v999_v17 = vmul.f32 %v1422_v30, %v2046_v5  ;;  %v998_v57 = vmul.f32 %v1422_v30, %v2044_v52 }
 0x46e   : > { %1427 = vrcp.f32 %v953_v13  ;;  %1042 = vmatpush1.bf16.xpose.msra.mxu1 %v1025_v40 }
 0x470   : > { %v1424_v55 = vpop.eup %1423 }
 0x471   : > { %v956_v16 = vpop.xlane.xlu0 %955  ;;  %v1001_v49 = vmul.f32 %v1424_v55, %v2054_v21  ;;  %v1000_v44 = vmul.f32 %v1424_v55, %v2052_v56 }
 0x472   : > { %1429 = vrcp.f32 %v956_v16 }
 0x473   : > { %v1028_v24 = vpack.c.bf16 %v1001_v49, %v999_v17  ;;  %v1027_v48 = vpack.c.bf16 %v1000_v44, %v998_v57 }
 0x474   : > { %v1426_v34 = vpop.eup %1425 }
 0x475   : > { %v959_v25 = vpop.xlane.xlu1 %958  ;;  %1043 = vmatprep.subr.bf16.mxu1 %v1028_v24  ;;  %v1003_v28 = vmul.f32 %v1426_v34, %v2062_v29  ;;  %v1002_v21 = vmul.f32 %v1426_v34, %v2060_v60 }
 0x476   : > { %1431 = vrcp.f32 %v959_v25  ;;  %1044 = vmatpush1.bf16.xpose.msra.mxu1 %v1027_v48 }
 0x478   : > { %v1428_v59 = vpop.eup %1427 }
 0x479   : > { %v962_v7 = vpop.xlane.xlu0 %961  ;;  %v1005_v5 = vmul.f32 %v1428_v59, %v2070_v38  ;;  %v1004_v52 = vmul.f32 %v1428_v59, %v2068_v0 }
 0x47a   : > { %1433 = vrcp.f32 %v962_v7 }
 0x47b   : > { %v1030_v32 = vpack.c.bf16 %v1005_v5, %v1003_v28  ;;  %v1029_v56 = vpack.c.bf16 %v1004_v52, %v1002_v21 }
 0x47c   : > { %v1430_v39 = vpop.eup %1429 }
 0x47d   : > { %v965_v33 = vpop.xlane.xlu1 %964  ;;  %1045 = vmatprep.subr.bf16.mxu1 %v1030_v32  ;;  %v1007_v37 = vmul.f32 %v1430_v39, %v2078_v18  ;;  %v1006_v29 = vmul.f32 %v1430_v39, %v2076_v4 }
 0x47e   : > { %1435 = vrcp.f32 %v965_v33  ;;  %1046 = vmatpush1.bf16.xpose.msra.mxu1 %v1029_v56 }
 0x480   : > { %v1432_v63 = vpop.eup %1431 }
 0x481   : > { %v1009_v10 = vmul.f32 %v1432_v63, %v2084_v9  ;;  %v1008_v38 = vmul.f32 %v1432_v63, %v2082_v50  ;;  %v1017_v50 = vpack.c.bf16 %v2100_v51, %v2100_v51 }
 0x483   : > { %v1032_v60 = vpack.c.bf16 %v1009_v10, %v1007_v37  ;;  %v1031_v46 = vpack.c.bf16 %v1008_v38, %v1006_v29 }
 0x484   : > { %v1434_v0 = vpop.eup %1433 }
 0x485   : > { %1047 = vmatprep.subr.bf16.mxu1 %v1032_v60  ;;  %v1011_v15 = vmul.f32 %v1434_v0, %v2090_v23  ;;  %v1010_v18 = vmul.f32 %v1434_v0, %v2088_v47  ;;  %v1076_v23 = vstv %s1075_s28  ;;  %s1471_s28 = sshll.u32 %s1597_s11, 4  ;;  %s1472_s28 = int_to_ptr.vmem [resolvable:$false] %s1471_s28 }
 0x486   : > { %1048 = vmatpush1.bf16.xpose.msra.mxu1 %v1031_v46  ;;  %s1473_s24 = scalar_lea.vmem %s1472_s28, 128  ;;  %p1474_p10 = scmp.lt.s32.totalorder %s2148_s12, %s1472_s28 }
 0x487   : > { %p1475_p3 = scmp.lt.s32.totalorder %s1473_s24, %s1467_s8 }
 0x488   : > { %v1436_v54 = vpop.eup %1435 }
 0x489   : > { %v1013_v41 = vmul.f32 %v1436_v54, %v2096_v61  ;;  %v1012_v9 = vmul.f32 %v1436_v54, %v2094_v58  ;;  %p1476_p13 = por %p1475_p3, %p1474_p10 }
 0x48b   : > { %v1034_v4 = vpack.c.bf16 %v1013_v41, %v1011_v15  ;;  %v1033_v22 = vpack.c.bf16 %v1012_v9, %v1010_v18  ;;  %p1477_p0 = pnand %p1476_p13, %p1470_p8 }
 0x48d   : > { %1049 = vmatprep.subr.bf16.mxu1 %v1034_v4 }
 0x48e   : > { %1050 = vmatpush1.bf16.xpose.msra.mxu1 %v1033_v22 }
 0x495   : > { %1068 = vmatmul.mubr.bf16.vlgmr.msra.gmra.mrb[0].mxu1 %v1017_v50 }
 0x568   : > { %v1069_v61 = vpop.f32.mrb[0].mxu1 }
 0x569   : > { %v1077_v47 = vmul.f32 %v1076_v23, %v1069_v61  ;;  %v1071_v58 = vpop.f32.mrb[1].mxu1 }
 0x56a   : > { %v1072_v14 = vpop.f32.mrb[2].mxu1 }
 0x56b   : > { %v1078_v43 = vadd.f32 %v1077_v47, %v1833_v36  ;;  %v1073_v3 = vpop.f32.mrb[3].mxu1 }
 0x56d   : > { %1079 = vst [vmem:[%s390_s27] sm:$0xf] %v1078_v43 }
 0x56e   : > { %1480 = shalt.err (!%p1477_p0)
}
 0x56f   : > { %s1481_s20 = scalar_lea.hbm %s2146_s10, 64  ;;  %s1485_s25 = scalar_lea.hbm %s2220_s9, 256 }
 0x570   : > { %p1482_p5 = scmp.ne.s32.totalorder %s2146_s10, %s1481_s20  ;;  %p1486_p12 = scmp.lt.u32.totalorder %s2146_s10, %s2220_s9 }
 0x571   : > { %p1487_p2 = scmp.lt.u32.totalorder %s1485_s25, %s1481_s20  ;;  %p1489_p4 = scmp.lt.u32.totalorder %s1481_s20, %s2146_s10 }
 0x572   : > { %p1483_p6 = pnand %p1482_p5, %p2238_p11 }
 0x573   : > { %p1488_p7 = por %p1487_p2, %p1486_p12 }
 0x574   : > { %p1484_p9 = pneg %p1483_p6 }
 0x575   : > { %p1490_p1 = por %p1489_p4, %p1488_p7 }
 0x577   : > { %p1491_p8 = pnand %p1490_p1, %p1484_p9 }
 0x579   : > { %1494 = shalt.err (!%p1491_p8)
}
 0x57a   : > { %1232 = dma.vmem_to_hbm [thread:$0]  (%p2238_p11), %s2148_s12, 64, %s2146_s10, %s1081_s19  }
 0x57b PF: > { %p1243_p10 = scmp.ge.s32.totalorder %s1589_s22, 2  ;;  %s1108_s21 = sand.u32 1, %s1549_s15  }
 0x57c   : > { %p2239_p3 = scmp.ne.s32.totalorder %s2234_s26, 0  ;;  %s1109_s8 = scalar_lea.sflag [#allocation9], %s1108_s21 }
 0x57e   : > { %p1239_p13 = pnand %p1243_p10, %p2239_p3 }
 0x580   : > { %1544 = dma.done.wait (!%p1239_p13), %s1109_s8, 64  }
 0x581   : > { %1546 = vsyncadd (!%p1239_p13), %s1109_s8, 4294967232  ;;  %s30_s22 = sadd.s32 1, %s1589_s22   ;;  %s2240_s19 = sld [smem:[#allocation13_spill]] }
 0x582   : > { %p27_p0 = scmp.ge.s32.totalorder %s30_s22, 6   ;;  %s2241_s8 = sld [smem:[#allocation14_spill]] }
 0x583   : > { %s2242_s20 = sld [smem:[#allocation15_spill]]  ;;  %s2243_s21 = sld [smem:[#allocation16_spill]] }
 0x584   : > { %s2244_s15 = smov %s1553_s16  ;;  %s2245_s16 = smov %s1557_s17 }
 0x585   : > { %s2246_s17 = smov %s1747_s3  ;;  %s2247_s3 = smov %s1565_s18 }
 0x586   : > { %s2248_s18 = smov %s1569_s5  ;;  %s2249_s5 = smov %s1744_s14 }
 0x587   :  { %29 = sbr.rel (!%p27_p0) target bundleno = 12 (0xc), region = 108 }
 0x58e   :  { %1114 = vsyncpa [#allocation8], 1 }
 0x58f   :  { %1116 = vsyncpa [#allocation8 + $0x1], 1 }
 0x590   :  { %1117 = vsyncpa [#allocation9], 1 }
 0x591   :  { %1119 = vsyncpa [#allocation9 + $0x1], 1 }

</bundles_post_ra>
